<compile_context>
chip_gen: v5e
topology: v5e:2x2
jax: 0.10.0
libtpu: 0.0.40
codegen_flags: <defaults>
</compile_context>

<pallas_src>
import functools

import jax
import jax.numpy as jnp
from jax.experimental import pallas as pl
from jax.experimental.pallas import tpu as pltpu

LANE = 128


def _pow(x, e):
    """Static-exponent power; repeated multiply for small integer exponents."""
    e = float(e)
    if e.is_integer() and 0 <= e <= 8:
        n = int(e)
        if n == 0:
            return jnp.ones_like(x)
        acc = x
        for _ in range(n - 1):
            acc = acc * x
        return acc
    return jnp.power(x, e)


def _focal_kernel(pred_ref, tgt_ref, posvals_ref, posmask_ref,
                  neg_ref, pos_ref,
                  *, alpha, gamma, sigmoid_clamp, ignore_high_fp,
                  rows, row_tile, steps):
    s = pl.program_id(0)   # split axis ("parallel": both TCs on v7x)
    i = pl.program_id(1)   # sequential reduction axis ("arbitrary")

    # Zero this split's resident partial-sum blocks on its first step.
    @pl.when(i == 0)
    def _():
        neg_ref[...] = jnp.zeros_like(neg_ref)
        pos_ref[...] = jnp.zeros_like(pos_ref)

    # ---- positive-sample loss: tiny resident block, computed once ----
    @pl.when((i == 0) & (s == 0))
    def _():
        pp = jax.nn.sigmoid(posvals_ref[...].astype(jnp.float32))
        pp = jnp.clip(pp, sigmoid_clamp, 1.0 - sigmoid_clamp)
        pos = jnp.log(pp) * _pow(1.0 - pp, alpha) * posmask_ref[...]
        pos_ref[...] = jnp.sum(pos, axis=0, keepdims=True).reshape(1, 1, LANE)

    # ---- negative-loss hot path over the heatmap tile ----
    p = jax.nn.sigmoid(pred_ref[...].astype(jnp.float32))
    p = jnp.clip(p, sigmoid_clamp, 1.0 - sigmoid_clamp)
    t = tgt_ref[...].astype(jnp.float32)
    neg = jnp.log(1.0 - p) * _pow(p, alpha) * _pow(1.0 - t, gamma)
    if ignore_high_fp > 0:                    # static branch
        neg = jnp.where(p < ignore_high_fp, neg, 0.0)
    if rows % row_tile != 0:                  # static: mask ragged last tile only
        base = (s * steps + i) * row_tile
        rid = base + jax.lax.broadcasted_iota(jnp.int32, neg.shape, 0)
        neg = jnp.where(rid < rows, neg, 0.0)

    # Sublane-only reduce (cheap VALU adds) per step; the cross-lane XLU
    # reduce is deferred to the wrapper, keeping the inner loop free of the
    # old SMEM sld/add/sst dependence chain.
    partial = jnp.sum(neg, axis=0, keepdims=True)                 # (1, LANE)
    neg_ref[...] = neg_ref[...] + partial.reshape(1, 1, LANE)


def heatmap_binary_focal_loss(pred, target, pos_inds, *,
                              alpha=2.0, gamma=4.0, beta=0.25,
                              sigmoid_clamp=1e-4, ignore_high_fp=-1,
                              reduction="mean", loss_weight=1.0,
                              weight=None, avg_factor=None,
                              row_tile=1024):
    """JAX/Pallas equivalent of HeatmapBinaryFocalLoss.forward."""
    pred_flat = pred.reshape(-1)          # native dtype, no upcast in HBM
    tgt_flat = target.reshape(-1)
    L = pred_flat.shape[0]

    if L % LANE != 0:
        # Rare robustness path: pad to a lane multiple.  target = 1 fill gives
        # (1 - t)^gamma = 0, i.e. zero negative-loss contribution.
        pad = LANE - (L % LANE)
        pred_flat = jnp.pad(pred_flat, (0, pad))
        tgt_flat = jnp.pad(tgt_flat, (0, pad), constant_values=1)
        L += pad
    rows = L // LANE
    pred2d = pred_flat.reshape(rows, LANE)      # pure reshape, no copy
    tgt2d = tgt_flat.reshape(rows, LANE)

    row_tile = min(int(row_tile), rows)         # small case: whole slab, 1 step
    num_tiles = pl.cdiv(rows, row_tile)
    num_splits = 2 if num_tiles % 2 == 0 else 1   # v7x: use both TensorCores
    steps = num_tiles // num_splits

    # Positive-sample logits: data-dependent gather stays in the wrapper as
    # glue; the positive-loss math itself runs in-kernel.
    pos_inds = pos_inds.astype(jnp.int32)
    P = int(pos_inds.shape[0])
    PROWS = max(1, pl.cdiv(P, LANE))
    PPAD = PROWS * LANE
    pos_raw = jnp.take(pred.reshape(-1), pos_inds).astype(jnp.float32)
    pos_vals = jnp.zeros((PPAD,), jnp.float32).at[:P].set(pos_raw).reshape(PROWS, LANE)
    pos_mask = jnp.zeros((PPAD,), jnp.float32).at[:P].set(1.0).reshape(PROWS, LANE)

    kernel = functools.partial(
        _focal_kernel,
        alpha=float(alpha), gamma=float(gamma),
        sigmoid_clamp=float(sigmoid_clamp),
        ignore_high_fp=float(ignore_high_fp),
        rows=rows, row_tile=row_tile, steps=steps)

    neg_parts, pos_parts = pl.pallas_call(
        kernel,
        out_shape=(jax.ShapeDtypeStruct((num_splits, 1, LANE), jnp.float32),
                   jax.ShapeDtypeStruct((num_splits, 1, LANE), jnp.float32)),
        grid_spec=pltpu.PrefetchScalarGridSpec(
            num_scalar_prefetch=0,
            grid=(num_splits, steps),
            in_specs=[
                pl.BlockSpec((row_tile, LANE), lambda s, i: (s * steps + i, 0)),
                pl.BlockSpec((row_tile, LANE), lambda s, i: (s * steps + i, 0)),
                pl.BlockSpec((PROWS, LANE), lambda s, i: (0, 0)),
                pl.BlockSpec((PROWS, LANE), lambda s, i: (0, 0)),
            ],
            out_specs=[
                pl.BlockSpec((1, 1, LANE), lambda s, i: (s, 0, 0)),
                pl.BlockSpec((1, 1, LANE), lambda s, i: (s, 0, 0)),
            ],
        ),
        compiler_params=pltpu.CompilerParams(
            dimension_semantics=("parallel", "arbitrary")),
    )(pred2d, tgt2d, pos_vals, pos_mask)

    # Tiny final reductions (num_splits x 128 lane partials) + loss assembly.
    pos_loss = -jnp.sum(pos_parts)
    neg_loss = -jnp.sum(neg_parts)
    if beta >= 0:
        pos_loss = beta * pos_loss
        neg_loss = (1.0 - beta) * neg_loss
    loss = pos_loss + neg_loss

    # mmcv weight_reduce_loss on the (already-scalar) loss.
    if weight is not None:
        loss = loss * weight
    if avg_factor is not None and reduction == "mean":
        loss = loss / avg_factor
    # reduction 'mean' / 'sum' / 'none' on a scalar is otherwise the identity.
    return loss_weight * loss


def _reference(pred, target, pos_inds, *, alpha, gamma, beta,
               sigmoid_clamp, ignore_high_fp, loss_weight):
    """Plain-JAX mirror of the PyTorch code (for verification)."""
    p = jnp.clip(jax.nn.sigmoid(pred.reshape(-1).astype(jnp.float32)),
                 sigmoid_clamp, 1.0 - sigmoid_clamp)
    t = target.reshape(-1).astype(jnp.float32)
    neg_w = (1.0 - t) ** gamma
    pos_pred = p[pos_inds]
    pos_loss = jnp.sum(jnp.log(pos_pred) * (1.0 - pos_pred) ** alpha)
    neg = jnp.log(1.0 - p) * p ** alpha * neg_w
    if ignore_high_fp > 0:
        neg = jnp.where(p < ignore_high_fp, neg, 0.0)
    neg_loss = jnp.sum(neg)
    pos_loss, neg_loss = -pos_loss, -neg_loss
    if beta >= 0:
        pos_loss = beta * pos_loss
        neg_loss = (1.0 - beta) * neg_loss
    return loss_weight * (pos_loss + neg_loss)


def _make_case(key, shape, n_pos):
    k1, k2, k3 = jax.random.split(key, 3)
    pred = jax.random.normal(k1, shape, dtype=jnp.float32) * 2.0
    target = jax.random.uniform(k2, shape, dtype=jnp.float32) * 0.9
    L = 1
    for d in shape:
        L *= d
    pos_inds = jax.random.choice(k3, L, shape=(n_pos,), replace=False).astype(jnp.int32)
    target = target.reshape(-1).at[pos_inds].set(1.0).reshape(shape)
    return pred, target, pos_inds


if __name__ == "__main__":
    # Module defaults: alpha=2.0, gamma=4.0, beta=0.25, sigmoid_clamp=1e-4,
    # ignore_high_fp=-1, reduction='mean', loss_weight=1.0.
    key = jax.random.PRNGKey(0)
    k_small, k_big = jax.random.split(key)

    # Small case (module-scale shapes): single grid step over the whole slab.
    pred, target, pos_inds = _make_case(k_small, (2, 4, 16, 16), 8)
    loss = heatmap_binary_focal_loss(
        pred, target, pos_inds,
        alpha=2.0, gamma=4.0, beta=0.25, sigmoid_clamp=1e-4,
        ignore_high_fp=-1, reduction="mean", loss_weight=1.0)
    loss = jax.block_until_ready(loss)
    ref = _reference(pred, target, pos_inds, alpha=2.0, gamma=4.0, beta=0.25,
                     sigmoid_clamp=1e-4, ignore_high_fp=-1, loss_weight=1.0)
    # Tile-wise accumulation order differs from one global sum -> f32-level
    # differences only; keep a relaxed tolerance.
    assert jnp.allclose(loss, ref, rtol=1e-4, atol=1e-4), (loss, ref)

    # Larger case exercising the 2-way split ("parallel" axis) and the
    # ragged-last-tile mask path: rows = 1920, row_tile = 1024.
    pred2, target2, pos_inds2 = _make_case(k_big, (2, 8, 96, 160), 32)
    loss2 = heatmap_binary_focal_loss(
        pred2, target2, pos_inds2,
        alpha=2.0, gamma=4.0, beta=0.25, sigmoid_clamp=1e-4,
        ignore_high_fp=-1, reduction="mean", loss_weight=1.0)
    loss2 = jax.block_until_ready(loss2)
    ref2 = _reference(pred2, target2, pos_inds2, alpha=2.0, gamma=4.0, beta=0.25,
                      sigmoid_clamp=1e-4, ignore_high_fp=-1, loss_weight=1.0)
    assert jnp.allclose(loss2, ref2, rtol=1e-4, atol=1e-4), (loss2, ref2)

    print("KERNEL_OK")
</pallas_src>

<mosaic_0001>
module attributes {stable_mosaic.version = 11 : i64} {
  func.func @_focal_kernel(%arg0: i32, %arg1: i32, %arg2: memref<16x128xf32, #tpu.memory_space<vmem>>, %arg3: memref<16x128xf32, #tpu.memory_space<vmem>>, %arg4: memref<1x128xf32, #tpu.memory_space<vmem>>, %arg5: memref<1x128xf32, #tpu.memory_space<vmem>>, %arg6: memref<1x1x128xf32, #tpu.memory_space<vmem>>, %arg7: memref<1x1x128xf32, #tpu.memory_space<vmem>>) attributes {dimension_semantics = [#tpu.dimension_semantics<parallel>, #tpu.dimension_semantics<arbitrary>], iteration_bounds = array<i64: 1, 1>, scalar_prefetch = 0 : i64, scratch_operands = 0 : i64, tpu.core_type = #tpu.core_type<tc>, window_params = [{transform_indices = @transform_0, window_bounds = array<i64: 16, 128>}, {transform_indices = @transform_1, window_bounds = array<i64: 16, 128>}, {pipeline_mode = #tpu.pipeline_mode<synchronous>, transform_indices = @transform_2, window_bounds = array<i64: 1, 128>}, {pipeline_mode = #tpu.pipeline_mode<synchronous>, transform_indices = @transform_3, window_bounds = array<i64: 1, 128>}, {transform_indices = @transform_4, window_bounds = array<i64: 1, 1, 128>}, {transform_indices = @transform_5, window_bounds = array<i64: 1, 1, 128>}]} {
    %c0_i32 = arith.constant 0 : i32
    %0 = arith.cmpi eq, %arg1, %c0_i32 : i32
    %1 = arith.extui %0 : i1 to i32
    %c0_i32_0 = arith.constant 0 : i32
    %2 = arith.cmpi ne, %1, %c0_i32_0 : i32
    scf.if %2 {
      %cst_18 = arith.constant 0.000000e+00 : f32
      %36 = vector.broadcast %cst_18 : f32 to vector<1x1x128xf32>
      %c0_19 = arith.constant 0 : index
      %c0_20 = arith.constant 0 : index
      %c0_21 = arith.constant 0 : index
      %37 = vector.load %arg6[%c0_19, %c0_20, %c0_21] : memref<1x1x128xf32, #tpu.memory_space<vmem>>, vector<1x1x128xf32>
      tpu.vector_store %arg6[%c0_19, %c0_20, %c0_21], %36 {strides = array<i32>} : memref<1x1x128xf32, #tpu.memory_space<vmem>>, vector<1x1x128xf32>,
      %cst_22 = arith.constant 0.000000e+00 : f32
      %38 = vector.broadcast %cst_22 : f32 to vector<1x1x128xf32>
      %c0_23 = arith.constant 0 : index
      %c0_24 = arith.constant 0 : index
      %c0_25 = arith.constant 0 : index
      %39 = vector.load %arg7[%c0_23, %c0_24, %c0_25] : memref<1x1x128xf32, #tpu.memory_space<vmem>>, vector<1x1x128xf32>
      tpu.vector_store %arg7[%c0_23, %c0_24, %c0_25], %38 {strides = array<i32>} : memref<1x1x128xf32, #tpu.memory_space<vmem>>, vector<1x1x128xf32>,
    } else {
    }
    %c0_i32_1 = arith.constant 0 : i32
    %3 = arith.cmpi eq, %arg1, %c0_i32_1 : i32
    %c0_i32_2 = arith.constant 0 : i32
    %4 = arith.cmpi eq, %arg0, %c0_i32_2 : i32
    %5 = arith.andi %3, %4 : i1
    %6 = arith.extui %5 : i1 to i32
    %c0_i32_3 = arith.constant 0 : i32
    %7 = arith.cmpi ne, %6, %c0_i32_3 : i32
    scf.if %7 {
      %c0_18 = arith.constant 0 : index
      %c0_19 = arith.constant 0 : index
      %36 = vector.load %arg4[%c0_18, %c0_19] : memref<1x128xf32, #tpu.memory_space<vmem>>, vector<1x128xf32>
      %37 = arith.negf %36 : vector<1x128xf32>
      %38 = math.exp %37 : vector<1x128xf32>
      %cst_20 = arith.constant 1.000000e+00 : f32
      %39 = vector.broadcast %cst_20 : f32 to vector<1x128xf32>
      %40 = arith.addf %39, %38 : vector<1x128xf32>
      %41 = arith.divf %39, %40 : vector<1x128xf32>
      %cst_21 = arith.constant 9.99999974E-5 : f32
      %cst_22 = arith.constant 0.999899983 : f32
      %42 = vector.broadcast %cst_21 : f32 to vector<1x128xf32>
      %43 = arith.maximumf %42, %41 : vector<1x128xf32>
      %44 = vector.broadcast %cst_22 : f32 to vector<1x128xf32>
      %45 = arith.minimumf %44, %43 : vector<1x128xf32>
      %46 = math.log %45 : vector<1x128xf32>
      %cst_23 = arith.constant 1.000000e+00 : f32
      %47 = vector.broadcast %cst_23 : f32 to vector<1x128xf32>
      %48 = arith.subf %47, %45 : vector<1x128xf32>
      %49 = arith.mulf %48, %48 : vector<1x128xf32>
      %50 = arith.mulf %46, %49 : vector<1x128xf32>
      %c0_24 = arith.constant 0 : index
      %c0_25 = arith.constant 0 : index
      %51 = vector.load %arg5[%c0_24, %c0_25] : memref<1x128xf32, #tpu.memory_space<vmem>>, vector<1x128xf32>
      %52 = arith.mulf %50, %51 : vector<1x128xf32>
      %cst_26 = arith.constant dense<0.000000e+00> : vector<128xf32>
      %53 = vector.multi_reduction <add>, %52, %cst_26 [0] : vector<1x128xf32> to vector<128xf32>
      %54 = vector.shape_cast %53 : vector<128xf32> to vector<1x128xf32>
      %55 = vector.shape_cast %54 : vector<1x128xf32> to vector<1x1x128xf32>
      %c0_27 = arith.constant 0 : index
      %c0_28 = arith.constant 0 : index
      %c0_29 = arith.constant 0 : index
      %56 = vector.load %arg7[%c0_27, %c0_28, %c0_29] : memref<1x1x128xf32, #tpu.memory_space<vmem>>, vector<1x1x128xf32>
      tpu.vector_store %arg7[%c0_27, %c0_28, %c0_29], %55 {strides = array<i32>} : memref<1x1x128xf32, #tpu.memory_space<vmem>>, vector<1x1x128xf32>,
    } else {
    }
    %c0 = arith.constant 0 : index
    %c0_4 = arith.constant 0 : index
    %8 = vector.load %arg2[%c0, %c0_4] : memref<16x128xf32, #tpu.memory_space<vmem>>, vector<16x128xf32>
    %9 = arith.negf %8 : vector<16x128xf32>
    %10 = math.exp %9 : vector<16x128xf32>
    %cst = arith.constant 1.000000e+00 : f32
    %11 = vector.broadcast %cst : f32 to vector<16x128xf32>
    %12 = arith.addf %11, %10 : vector<16x128xf32>
    %13 = arith.divf %11, %12 : vector<16x128xf32>
    %cst_5 = arith.constant 9.99999974E-5 : f32
    %cst_6 = arith.constant 0.999899983 : f32
    %14 = vector.broadcast %cst_5 : f32 to vector<16x128xf32>
    %15 = arith.maximumf %14, %13 : vector<16x128xf32>
    %16 = vector.broadcast %cst_6 : f32 to vector<16x128xf32>
    %17 = arith.minimumf %16, %15 : vector<16x128xf32>
    %c0_7 = arith.constant 0 : index
    %c0_8 = arith.constant 0 : index
    %18 = vector.load %arg3[%c0_7, %c0_8] : memref<16x128xf32, #tpu.memory_space<vmem>>, vector<16x128xf32>
    %cst_9 = arith.constant 1.000000e+00 : f32
    %19 = vector.broadcast %cst_9 : f32 to vector<16x128xf32>
    %20 = arith.subf %19, %17 : vector<16x128xf32>
    %21 = math.log %20 : vector<16x128xf32>
    %22 = arith.mulf %17, %17 : vector<16x128xf32>
    %23 = arith.mulf %21, %22 : vector<16x128xf32>
    %cst_10 = arith.constant 1.000000e+00 : f32
    %24 = vector.broadcast %cst_10 : f32 to vector<16x128xf32>
    %25 = arith.subf %24, %18 : vector<16x128xf32>
    %26 = arith.mulf %25, %25 : vector<16x128xf32>
    %27 = arith.mulf %26, %25 : vector<16x128xf32>
    %28 = arith.mulf %27, %25 : vector<16x128xf32>
    %29 = arith.mulf %23, %28 : vector<16x128xf32>
    %cst_11 = arith.constant dense<0.000000e+00> : vector<128xf32>
    %30 = vector.multi_reduction <add>, %29, %cst_11 [0] : vector<16x128xf32> to vector<128xf32>
    %31 = vector.shape_cast %30 : vector<128xf32> to vector<1x128xf32>
    %c0_12 = arith.constant 0 : index
    %c0_13 = arith.constant 0 : index
    %c0_14 = arith.constant 0 : index
    %32 = vector.load %arg6[%c0_12, %c0_13, %c0_14] : memref<1x1x128xf32, #tpu.memory_space<vmem>>, vector<1x1x128xf32>
    %33 = vector.shape_cast %31 : vector<1x128xf32> to vector<1x1x128xf32>
    %34 = arith.addf %32, %33 : vector<1x1x128xf32>
    %c0_15 = arith.constant 0 : index
    %c0_16 = arith.constant 0 : index
    %c0_17 = arith.constant 0 : index
    %35 = vector.load %arg6[%c0_15, %c0_16, %c0_17] : memref<1x1x128xf32, #tpu.memory_space<vmem>>, vector<1x1x128xf32>
    tpu.vector_store %arg6[%c0_15, %c0_16, %c0_17], %34 {strides = array<i32>} : memref<1x1x128xf32, #tpu.memory_space<vmem>>, vector<1x1x128xf32>,
    return
  }
  func.func @transform_0(%arg0: i32, %arg1: i32) -> (i32, i32) {
    %c1_i32 = arith.constant 1 : i32
    %0 = arith.muli %arg0, %c1_i32 : i32
    %1 = arith.addi %0, %arg1 : i32
    %c0_i32 = arith.constant 0 : i32
    %c0_i32_0 = arith.constant 0 : i32
    return %1, %c0_i32 : i32, i32
  }
  func.func @transform_1(%arg0: i32, %arg1: i32) -> (i32, i32) {
    %c1_i32 = arith.constant 1 : i32
    %0 = arith.muli %arg0, %c1_i32 : i32
    %1 = arith.addi %0, %arg1 : i32
    %c0_i32 = arith.constant 0 : i32
    %c0_i32_0 = arith.constant 0 : i32
    return %1, %c0_i32 : i32, i32
  }
  func.func @transform_2(%arg0: i32, %arg1: i32) -> (i32, i32) {
    %c0_i32 = arith.constant 0 : i32
    %c0_i32_0 = arith.constant 0 : i32
    %c0_i32_1 = arith.constant 0 : i32
    return %c0_i32, %c0_i32_0 : i32, i32
  }
  func.func @transform_3(%arg0: i32, %arg1: i32) -> (i32, i32) {
    %c0_i32 = arith.constant 0 : i32
    %c0_i32_0 = arith.constant 0 : i32
    %c0_i32_1 = arith.constant 0 : i32
    return %c0_i32, %c0_i32_0 : i32, i32
  }
  func.func @transform_4(%arg0: i32, %arg1: i32) -> (i32, i32, i32) {
    %c0_i32 = arith.constant 0 : i32
    %c0_i32_0 = arith.constant 0 : i32
    %c0_i32_1 = arith.constant 0 : i32
    return %arg0, %c0_i32, %c0_i32_0 : i32, i32, i32
  }
  func.func @transform_5(%arg0: i32, %arg1: i32) -> (i32, i32, i32) {
    %c0_i32 = arith.constant 0 : i32
    %c0_i32_0 = arith.constant 0 : i32
    %c0_i32_1 = arith.constant 0 : i32
    return %arg0, %c0_i32, %c0_i32_0 : i32, i32, i32
  }
}

</mosaic_0001>

<bundles_post_ra>
// kernel: tpu_custom_call.1
= control target key start
LH: loop header
LB: loop body
LE: loop exit
PB: predicated region body
PF: predicated region fallthrough
CT: control target
= control target key end

     0   :  { %11 = vsyncpa [#allocation3], 0  ;;  %s413_s0 = inlined_call_operand.hbm [shape: f32[16,128], index: 0, kind: input, shape index: {}]   ;;  %s414_s1 = inlined_call_operand.hbm [shape: f32[16,128], index: 1, kind: input, shape index: {}]   ;;  %s415_s2 = inlined_call_operand.vmem [shape: f32[1,128], index: 2, kind: input, shape index: {}]   ;;  %s416_s3 = inlined_call_operand.vmem [shape: f32[1,128], index: 3, kind: input, shape index: {}]   ;;  %s417_s4 = inlined_call_operand.hbm [shape: f32[1,1,128], index: 4, kind: output, shape index: {0}]   ;;  %s418_s5 = inlined_call_operand.hbm [shape: f32[1,1,128], index: 5, kind: output, shape index: {1}]  }
   0x1   :  { %12 = vsyncpa [#allocation6], 0 }
   0x2   :  { %13 = vsyncpa [#allocation4], 0 }
   0x3   :  { %14 = vsyncpa [#allocation9], 0  ;;  %s23_s20 = sshll.u32 %s413_s0, 4  ;;  %s349_s21 = smov [#allocation2]   ;;  %s24_s20 = int_to_ptr.hbm [resolvable:$true] %s23_s20 }
   0x4   :  { %s25_s22 = sshll.u32 %s349_s21, 4  ;;  %s40_s25 = sshll.u32 %s414_s1, 4  ;;  %s26_s22 = int_to_ptr.vmem [resolvable:$true] %s25_s22  ;;  %s41_s25 = int_to_ptr.hbm [resolvable:$true] %s40_s25 }
   0x5   :  { %s350_s26 = smov 128   ;;  %s351_s27 = smov 8  }
   0x6   :  { %31 = dma.hbm_to_vmem [thread:$0]  %s24_s20, 256, %s26_s22, [#allocation3], %s350_s26, %s350_s26, %s351_s27  }
   0x7   :  { %s352_s28 = smov [#allocation5]  }
   0x8   :  { %s42_s29 = sshll.u32 %s352_s28, 4  ;;  %s43_s29 = int_to_ptr.vmem [resolvable:$true] %s42_s29 }
   0x9   :  { %48 = dma.hbm_to_vmem [thread:$0]  %s41_s25, 256, %s43_s29, [#allocation6], %s350_s26, %s350_s26, %s351_s27  }
   0xa   :  { %341 = dma.done.wait [#allocation3], 256  }
   0xb   :  { %342 = vsyncadd [#allocation3], 4294967040 }
   0xc   :  { %343 = dma.done.wait [#allocation6], 256  }
   0xd   :  { %344 = vsyncadd [#allocation6], 4294967040  ;;  %v353_v0 = vmov 0.0   ;;  %v76_v1 = vld [vmem:[%s415_s2] sm:$0x1]  ;;  %v108_v3 = vld [vmem:[#allocation2 + $0x8] sm:$0xff] }
   0xe   :  { %69 = vst [vmem:[#allocation7] sm:$0x1] %v353_v0  ;;  %v107_v2 = vld [vmem:[#allocation2] sm:$0xff]  ;;  %v217_v4 = vmul.f32 -1.442695, %v76_v1  ;;  %v151_v41 = vld [vmem:[#allocation5] sm:$0xff] }
   0xf   :  { %70 = vst [vmem:[#allocation8] sm:$0x1] %v353_v0  ;;  %v218_v5 = vmul.f32 -1.442695, %v107_v2  ;;  %v219_v6 = vmul.f32 -1.442695, %v108_v3 }
  0x10   :  { %227 = vpow2.f32 %v217_v4  ;;  %v152_v46 = vld [vmem:[#allocation5 + $0x8] sm:$0xff]  ;;  %v163_v49 = vsub.f32 1.0, %v151_v41  ;;  %v103_v63 = vld [vmem:[%s416_s3] sm:$0x1]  ;;  %s354_s6 = smov [#allocation8]   ;;  %s201_s10 = sshll.u32 %s418_s5, 4  ;;  %s202_s10 = int_to_ptr.hbm [resolvable:$true] %s201_s10 }
  0x11   :  { %229 = vpow2.f32 %v218_v5  ;;  %v164_v52 = vsub.f32 1.0, %v152_v46  ;;  %s199_s7 = sshll.u32 %s354_s6, 4  ;;  %s355_s3 = smov [#allocation7]   ;;  %s200_s7 = int_to_ptr.vmem [resolvable:$true] %s199_s7 }
  0x12   :  { %231 = vpow2.f32 %v219_v6  ;;  %v165_v56 = vmul.f32 %v163_v49, %v163_v49  ;;  %s188_s5 = sshll.u32 %s355_s3, 4  ;;  %s190_s13 = sshll.u32 %s417_s4, 4  ;;  %s189_s5 = int_to_ptr.vmem [resolvable:$true] %s188_s5  ;;  %s191_s13 = int_to_ptr.hbm [resolvable:$true] %s190_s13 }
  0x13   :  { %v166_v58 = vmul.f32 %v164_v52, %v164_v52 }
  0x14   :  { %v167_v61 = vmul.f32 %v165_v56, %v163_v49 }
  0x15   :  { %v168_v1 = vmul.f32 %v166_v58, %v164_v52 }
  0x16   :  { %v228_v7 = vpop.eup %227  ;;  %v169_v6 = vmul.f32 %v167_v61, %v163_v49 }
  0x17   :  { %v230_v8 = vpop.eup %229  ;;  %v80_v9 = vadd.f32 1.0, %v228_v7 }
  0x18   :  { %v232_v10 = vpop.eup %231  ;;  %v115_v11 = vadd.f32 1.0, %v230_v8 }
  0x19   :  { %233 = vrcp.f32 %v80_v9  ;;  %v116_v12 = vadd.f32 1.0, %v232_v10  ;;  %v92_v16 = vand.u32 2147483648, %v80_v9  ;;  %vm86_vm0 = vweird.f32 %v80_v9 }
  0x1a   :  { %235 = vrcp.f32 %v115_v11  ;;  %v90_v17 = vand.u32 2147483647, %v80_v9  ;;  %vm122_vm2 = vweird.f32 %v115_v11  ;;  %v128_v21 = vand.u32 2147483648, %v115_v11 }
  0x1b   :  { %237 = vrcp.f32 %v116_v12  ;;  %v126_v23 = vand.u32 2147483647, %v115_v11  ;;  %v93_v26 = vor.u32 1.1754944e-38, %v92_v16  ;;  %vm137_vm4 = vweird.f32 %v116_v12 }
  0x1c   :  { %v143_v27 = vand.u32 2147483648, %v116_v12  ;;  %v141_v31 = vand.u32 2147483647, %v116_v12  ;;  %vm91_vm7 = vcmp.eq.f32.partialorder %v90_v17, 8.507059e+37  ;;  %v129_v33 = vor.u32 1.1754944e-38, %v128_v21 }
  0x1d   :  { %vm127_vm9 = vcmp.eq.f32.partialorder %v126_v23, 8.507059e+37  ;;  %v180_v21 = vld [vmem:[#allocation7] sm:$0x1] }
  0x1e   :  { %v144_v37 = vor.u32 1.1754944e-38, %v143_v27  ;;  %vm142_vm11 = vcmp.eq.f32.partialorder %v141_v31, 8.507059e+37 }
  0x1f   :  { %v234_v13 = vpop.eup %233 }
  0x20   :  { %v236_v14 = vpop.eup %235  ;;  %v82_v15 = vmul.f32 %v234_v13, %v80_v9  ;;  %vm87_vm1 = vweird.f32 %v234_v13 }
  0x21   :  { %v118_v18 = vmul.f32 %v236_v14, %v115_v11  ;;  %v238_v19 = vpop.eup %237  ;;  %vm123_vm3 = vweird.f32 %v236_v14  ;;  %vm396_vm5 = vmor %vm86_vm0, %vm87_vm1  ;;  %v170_v11 = vmul.f32 %v168_v1, %v164_v52 }
  0x22   :  { %v83_v20 = vsub.f32 1.0, %v82_v15  ;;  %v133_v24 = vmul.f32 %v238_v19, %v116_v12  ;;  %vm138_vm6 = vweird.f32 %v238_v19  ;;  %vm124_vm8 = vmor %vm122_vm2, %vm123_vm3 }
  0x23   :  { %v119_v22 = vsub.f32 1.0, %v118_v18  ;;  %vm139_vm10 = vmor %vm137_vm4, %vm138_vm6 }
  0x24   :  { %v84_v25 = vmul.f32 %v234_v13, %v83_v20  ;;  %v134_v30 = vsub.f32 1.0, %v133_v24 }
  0x25   :  { %v120_v29 = vmul.f32 %v236_v14, %v119_v22 }
  0x26   :  { %v85_v32 = vadd.f32 %v234_v13, %v84_v25  ;;  %v135_v35 = vmul.f32 %v238_v19, %v134_v30 }
  0x27   :  { %v121_v34 = vadd.f32 %v236_v14, %v120_v29 }
  0x28   :  { %v89_v36 = vsel %vm396_vm5, %v234_v13, %v85_v32  ;;  %v136_v40 = vadd.f32 %v238_v19, %v135_v35 }
  0x29   :  { %v94_v38 = vsel %vm91_vm7, %v93_v26, %v89_v36  ;;  %v125_v39 = vsel %vm124_vm8, %v236_v14, %v121_v34 }
  0x2a   :  { %v96_v42 = vmax.f32 %v94_v38, 0.0001  ;;  %v130_v43 = vsel %vm127_vm9, %v129_v33, %v125_v39  ;;  %v140_v44 = vsel %vm139_vm10, %v238_v19, %v136_v40 }
  0x2b   :  { %v147_v45 = vmax.f32 %v130_v43, 0.0001  ;;  %v145_v48 = vsel %vm142_vm11, %v144_v37, %v140_v44 }
  0x2c   :  { %v97_v47 = vmin.f32 %v96_v42, 0.9999  ;;  %v148_v50 = vmax.f32 %v145_v48, 0.0001 }
  0x2d   :  { %v149_v51 = vmin.f32 %v147_v45, 0.9999 }
  0x2e   :  { %239 = vlog2.f32 %v97_v47  ;;  %v100_v53 = vsub.f32 1.0, %v97_v47  ;;  %v150_v54 = vmin.f32 %v148_v50, 0.9999 }
  0x2f   :  { %v153_v55 = vsub.f32 1.0, %v149_v51  ;;  %v159_v0 = vmul.f32 %v149_v51, %v149_v51 }
  0x30   :  { %v154_v57 = vsub.f32 1.0, %v150_v54  ;;  %v101_v59 = vmul.f32 %v100_v53, %v100_v53  ;;  %v160_v5 = vmul.f32 %v150_v54, %v150_v54 }
  0x31   :  { %241 = vlog2.f32 %v153_v55 }
  0x32   :  { %243 = vlog2.f32 %v154_v57 }
  0x34   :  { %v240_v60 = vpop.eup %239 }
  0x35   :  { %v99_v62 = vmul.f32 0.6931472, %v240_v60 }
  0x37   :  { %v242_v2 = vpop.eup %241  ;;  %v102_v3 = vmul.f32 %v101_v59, %v99_v62 }
  0x38   :  { %v156_v4 = vmul.f32 0.6931472, %v242_v2  ;;  %v244_v7 = vpop.eup %243 }
  0x39   :  { %v104_v8 = vmul.f32 %v103_v63, %v102_v3  ;;  %v158_v9 = vmul.f32 0.6931472, %v244_v7 }
  0x3a   :  { %v161_v10 = vmul.f32 %v159_v0, %v156_v4 }
  0x3b   :  { %106 = vst [vmem:[#allocation8] sm:$0x1] %v104_v8  ;;  %v162_v12 = vmul.f32 %v160_v5, %v158_v9 }
  0x3c   :  { %v171_v13 = vmul.f32 %v169_v6, %v161_v10  ;;  %204 = dma.vmem_to_hbm [thread:$0]  %s200_s7, 16, %s202_s10, [#allocation9]  }
  0x3d   :  { %v172_v14 = vmul.f32 %v170_v11, %v162_v12 }
  0x3f   :  { %v173_v15 = vadd.f32 %v172_v14, %v171_v13 }
  0x41   :  { %v174_v16 = vrot.slane %v173_v15, 4 }
  0x43   :  { %v175_v17 = vadd.f32 %v174_v16, %v173_v15 }
  0x45   :  { %v176_v18 = vrot.slane %v175_v17, 2 }
  0x47   :  { %v177_v19 = vadd.f32 %v176_v18, %v175_v17 }
  0x49   :  { %v178_v20 = vrot.slane %v177_v19, 1 }
  0x4b   :  { %v179_v22 = vadd.f32 %v178_v20, %v177_v19 }
  0x4d   :  { %v181_v23 = vadd.f32 %v180_v21, %v179_v22 }
  0x4f   :  { %182 = vst [vmem:[#allocation7] sm:$0x1] %v181_v23 }
  0x50   :  { %193 = dma.vmem_to_hbm [thread:$0]  %s189_s5, 16, %s191_s13, [#allocation4]  }
  0x51   :  { %345 = dma.done.wait [#allocation4], 16  }
  0x52   :  { %346 = vsyncadd [#allocation4], 4294967280 }
  0x53   :  { %347 = dma.done.wait [#allocation9], 16  }
  0x54   :  { %348 = vsyncadd [#allocation9], 4294967280 }
  0x55   :  { %213 = vsyncpa [#allocation3], 1 }
  0x56   :  { %214 = vsyncpa [#allocation6], 1 }
  0x57   :  { %215 = vsyncpa [#allocation4], 1 }
  0x58   :  { %216 = vsyncpa [#allocation9], 1 }

</bundles_post_ra>
